<compile_context>
chip_gen: v7x
topology: tpu7x:2x2x1
jax: 0.10.0
libtpu: 0.0.40
codegen_flags: <defaults>
</compile_context>

<pallas_src>
import functools

import jax
import jax.numpy as jnp
from jax.experimental import pallas as pl
from jax.experimental.pallas import tpu as pltpu


_VMEM_LIMIT = 48 * 1024 * 1024          # scoped VMEM request (safe on v5e/v6e/v7x)
_FAST_PATH_BYTES = 12 * 1024 * 1024     # x <= this  =>  single fused VMEM-resident pass
_STATS_BLOCK_BYTES = 16 * 1024 * 1024   # pass-1 x block budget (~2x in flight)
_APPLY_BLOCK_BYTES = 8 * 1024 * 1024    # pass-2 x block budget (~4x in flight)


# ---------------------------------------------------------------------------
# Fast path: whole x resident in VMEM, stats + apply fused in one kernel.
# ---------------------------------------------------------------------------
def _fused_kernel(x_ref, o_ref, *, normtype, eps):
    x = x_ref[...].astype(jnp.float32)                         # (B, C, T)
    if normtype == "minmax":
        mn = jnp.min(jnp.min(x, axis=2, keepdims=True), axis=0, keepdims=True)
        mx = jnp.max(jnp.max(x, axis=2, keepdims=True), axis=0, keepdims=True)
        out = (x - mn) * pl.reciprocal(mx - mn + eps, approx=False)
    elif normtype == "mean":
        n = x.shape[0] * x.shape[2]
        s = jnp.sum(jnp.sum(x, axis=2, keepdims=True), axis=0, keepdims=True)
        out = x - s * (1.0 / n)
    elif normtype == "standard":
        n = x.shape[0] * x.shape[2]
        s = jnp.sum(jnp.sum(x, axis=2, keepdims=True), axis=0, keepdims=True)
        mean = s * (1.0 / n)
        d = x - mean
        var = jnp.sum(jnp.sum(d * d, axis=2, keepdims=True), axis=0,
                      keepdims=True) * (1.0 / max(n - 1, 1))
        out = d * pl.reciprocal(jnp.sqrt(var) + eps, approx=False)
    else:
        raise NotImplementedError(normtype)
    o_ref[...] = out.astype(o_ref.dtype)


# ---------------------------------------------------------------------------
# Pass 1: per-channel stats over dims (0, 2), finalized into (shift, scale).
#   minmax:   shift = min,  scale = 1 / (max - min + eps)
#   mean:     shift = mean, scale = 1
#   standard: shift = mean, scale = 1 / (std + eps)   (std: ddof=1)
# ---------------------------------------------------------------------------
def _stats_kernel(x_ref, s0_ref, s1_ref, *, normtype, eps, t_total, t_tile,
                  n_count):
    bi = pl.program_id(1)
    ti = pl.program_id(2)
    first = (bi == 0) & (ti == 0)
    last = (bi == pl.num_programs(1) - 1) & (ti == pl.num_programs(2) - 1)

    x = x_ref[...].astype(jnp.float32)              # (b_tile, c_tile, t_tile)

    need_mask = (t_total % t_tile) != 0             # static Python bool
    if need_mask:
        col = jax.lax.broadcasted_iota(jnp.int32, x.shape, 2)
        valid = col < (t_total - ti * t_tile)

    if normtype == "minmax":
        x_min = jnp.where(valid, x, jnp.inf) if need_mask else x
        x_max = jnp.where(valid, x, -jnp.inf) if need_mask else x
        tile_min = jnp.min(jnp.min(x_min, axis=0), axis=-1, keepdims=True)
        tile_max = jnp.max(jnp.max(x_max, axis=0), axis=-1, keepdims=True)

        @pl.when(first)
        def _():
            s0_ref[...] = jnp.full_like(s0_ref, jnp.inf)
            s1_ref[...] = jnp.full_like(s1_ref, -jnp.inf)

        s0_ref[...] = jnp.minimum(s0_ref[...], tile_min)
        s1_ref[...] = jnp.maximum(s1_ref[...], tile_max)
    else:  # mean / standard: accumulate sum and sum of squares in f32
        if need_mask:
            x = jnp.where(valid, x, 0.0)
        tile_sum = jnp.sum(jnp.sum(x, axis=0), axis=-1, keepdims=True)
        tile_sq = jnp.sum(jnp.sum(x * x, axis=0), axis=-1, keepdims=True)

        @pl.when(first)
        def _():
            s0_ref[...] = jnp.zeros_like(s0_ref)
            s1_ref[...] = jnp.zeros_like(s1_ref)

        s0_ref[...] = s0_ref[...] + tile_sum
        s1_ref[...] = s1_ref[...] + tile_sq

    # Finalize once per C tile (last visit): pass 2 is then a single FMA/elem.
    @pl.when(last)
    def _():
        if normtype == "minmax":
            mn = s0_ref[...]
            mx = s1_ref[...]
            s1_ref[...] = pl.reciprocal(mx - mn + eps, approx=False)
        elif normtype == "mean":
            s0_ref[...] = s0_ref[...] * (1.0 / n_count)
            s1_ref[...] = jnp.ones_like(s1_ref)
        else:  # standard
            mean = s0_ref[...] * (1.0 / n_count)
            # TODO(synk): sumsq - n*mean^2 can cancel for very large B*T; use a
            # centered / Welford-style combine if tighter accuracy is needed.
            var = (s1_ref[...] - n_count * mean * mean) * (1.0 / max(n_count - 1, 1))
            std = jnp.sqrt(jnp.maximum(var, 0.0))
            s0_ref[...] = mean
            s1_ref[...] = pl.reciprocal(std + eps, approx=False)


# ---------------------------------------------------------------------------
# Pass 2: out = (x - shift) * scale        (fully parallel grid)
# ---------------------------------------------------------------------------
def _apply_kernel(x_ref, shift_ref, scale_ref, o_ref):
    # TODO(synk): keep bf16 arithmetic here for bf16 inputs on v6e/v7x.
    x = x_ref[...].astype(jnp.float32)              # (b_tile, c_tile, t_tile)
    shift = shift_ref[...][None, :, :]              # (1, c_tile, 1)
    scale = scale_ref[...][None, :, :]
    o_ref[...] = ((x - shift) * scale).astype(o_ref.dtype)


# ---------------------------------------------------------------------------
# Tiling heuristics
# ---------------------------------------------------------------------------
def _pick_c_tile(C):
    """Sublane (kept-axis) tile: multiple-of-8 divisor of C so megacore can
    shard the 'parallel' C axis; fall back to full C when C is small / odd."""
    if C % 8 != 0 or C < 16:
        return C
    for t in (256, 128, 64, 32, 16, 8):
        if C % t == 0 and C // t >= 2:
            return t
    return C


def _pick_bt_tiles(B, T, c_tile, itemsize, budget):
    """Pick (b_tile, t_tile). If the (c_tile, T) slab fits the budget use full
    T and grow a leading batch block (divisor of B) to fill it (bigger DMAs,
    fewer grid steps). Otherwise use a lane-dense (multiple-of-128) T tile."""
    slab = c_tile * T * itemsize
    if slab <= budget:
        t_tile = T
        max_b = max(1, budget // max(1, slab))
        b_tile = 1
        for d in range(min(B, max_b), 0, -1):
            if B % d == 0:
                b_tile = d
                break
        return b_tile, t_tile
    t = budget // max(1, c_tile * itemsize)
    t_tile = max(128, (t // 128) * 128)
    if t_tile >= T:
        t_tile = T
    return 1, t_tile


# ---------------------------------------------------------------------------
# Wrapper (Scaler.forward, statistic='instance')
# ---------------------------------------------------------------------------
def scaler_forward(x, statistic="instance", normtype="minmax", dims=(0, 2),
                   eps=1e-8, *, t_tile=None, max_fused_bytes=_FAST_PATH_BYTES,
                   donate_input=False):
    """Pallas equivalent of Scaler.forward for statistic='instance'.

    x: (B, C, T). dims=(0, 2): reduce over batch and time, keep channel.
    """
    if statistic != "instance":
        # TODO(synk): statistic='dataset' needs checkpoint-loaded mean /
        # mean_squared buffers (module state); not part of this kernel.
        raise NotImplementedError(statistic)
    if normtype not in ("minmax", "mean", "standard"):
        raise NotImplementedError(normtype)
    assert tuple(dims) == (0, 2), "kernel layout assumes dims=(0, 2)"
    assert x.ndim == 3

    B, C, T = x.shape
    itemsize = jnp.dtype(x.dtype).itemsize
    total_bytes = B * C * T * itemsize

    # ---- fast path: x fits in VMEM -> one fused pass (1 read + 1 write) ----
    if total_bytes <= max_fused_bytes:
        return pl.pallas_call(
            functools.partial(_fused_kernel, normtype=normtype, eps=eps),
            out_shape=jax.ShapeDtypeStruct(x.shape, x.dtype),
            compiler_params=pltpu.CompilerParams(vmem_limit_bytes=_VMEM_LIMIT),
        )(x)

    # ---- two streaming passes ----
    c_tile = _pick_c_tile(C)
    if t_tile is not None:
        t1_tile = t2_tile = min(int(t_tile), T)
        b1_tile = b2_tile = 1
    else:
        b1_tile, t1_tile = _pick_bt_tiles(B, T, c_tile, itemsize, _STATS_BLOCK_BYTES)
        b2_tile, t2_tile = _pick_bt_tiles(B, T, c_tile, itemsize, _APPLY_BLOCK_BYTES)

    n_c = C // c_tile
    stat_spec = pl.BlockSpec((c_tile, 1), lambda ci, bi, ti: (ci, 0))

    # pass 1: per-channel (shift, scale)
    grid1 = (n_c, B // b1_tile, pl.cdiv(T, t1_tile))
    x1_spec = pl.BlockSpec((b1_tile, c_tile, t1_tile),
                           lambda ci, bi, ti: (bi, ci, ti))
    shift, scale = pl.pallas_call(
        functools.partial(_stats_kernel, normtype=normtype, eps=eps,
                          t_total=T, t_tile=t1_tile, n_count=B * T),
        out_shape=(jax.ShapeDtypeStruct((C, 1), jnp.float32),
                   jax.ShapeDtypeStruct((C, 1), jnp.float32)),
        grid=grid1,
        in_specs=[x1_spec],
        out_specs=(stat_spec, stat_spec),
        compiler_params=pltpu.CompilerParams(
            dimension_semantics=("parallel", "arbitrary", "arbitrary"),
            vmem_limit_bytes=_VMEM_LIMIT),
    )(x)

    # pass 2: out = (x - shift) * scale
    grid2 = (n_c, B // b2_tile, pl.cdiv(T, t2_tile))
    x2_spec = pl.BlockSpec((b2_tile, c_tile, t2_tile),
                           lambda ci, bi, ti: (bi, ci, ti))
    out = pl.pallas_call(
        _apply_kernel,
        out_shape=jax.ShapeDtypeStruct((B, C, T), x.dtype),
        grid=grid2,
        in_specs=[x2_spec, stat_spec, stat_spec],
        out_specs=x2_spec,
        input_output_aliases=({0: 0} if donate_input else {}),
        compiler_params=pltpu.CompilerParams(
            dimension_semantics=("parallel", "parallel", "parallel"),
            vmem_limit_bytes=_VMEM_LIMIT),
    )(x, shift, scale)
    return out


# ---------------------------------------------------------------------------
# Pure-JAX reference
# ---------------------------------------------------------------------------
def _reference(x, normtype="minmax", dims=(0, 2), eps=1e-8):
    if normtype == "minmax":
        mn = jnp.min(x, axis=dims, keepdims=True)
        mx = jnp.max(x, axis=dims, keepdims=True)
        return (x - mn) / (mx - mn + eps)
    if normtype == "mean":
        return x - jnp.mean(x, axis=dims, keepdims=True)
    if normtype == "standard":
        mean = jnp.mean(x, axis=dims, keepdims=True)
        std = jnp.std(x, axis=dims, keepdims=True, ddof=1)
        return (x - mean) / (std + eps)
    raise NotImplementedError(normtype)


if __name__ == "__main__":
    key = jax.random.PRNGKey(0)
    B, C, T = 2, 4, 16
    x = jax.random.normal(key, (B, C, T), dtype=jnp.float32)

    # fast path (x fits in VMEM -> single fused pass), default normtype first
    for nt in ("minmax", "mean", "standard"):
        out = jax.block_until_ready(
            scaler_forward(x, statistic="instance", normtype=nt,
                           dims=(0, 2), eps=1e-8))
        assert out.shape == x.shape and out.dtype == x.dtype
        assert jnp.allclose(out, _reference(x, normtype=nt),
                            atol=1e-5, rtol=1e-5), nt

    # forced two-pass path with a masked T tail (T % t_tile != 0)
    x2 = jax.random.normal(jax.random.PRNGKey(1), (2, 8, 300), dtype=jnp.float32)
    for nt in ("minmax", "standard"):
        o2 = jax.block_until_ready(
            scaler_forward(x2, normtype=nt, t_tile=128, max_fused_bytes=0))
        assert jnp.allclose(o2, _reference(x2, normtype=nt),
                            atol=1e-5, rtol=1e-5), nt

    # forced two-pass path with a batched (b_tile > 1) block
    x3 = jax.random.normal(jax.random.PRNGKey(2), (4, 8, 256), dtype=jnp.float32)
    o3 = jax.block_until_ready(
        scaler_forward(x3, normtype="minmax", max_fused_bytes=0))
    assert jnp.allclose(o3, _reference(x3, normtype="minmax"),
                        atol=1e-5, rtol=1e-5)

    print("KERNEL_OK")
</pallas_src>

<mosaic_0001>
module attributes {stable_mosaic.version = 11 : i64} {
  func.func @_fused_kernel(%arg0: memref<2x4x16xf32, #tpu.memory_space<vmem>>, %arg1: memref<2x4x16xf32, #tpu.memory_space<vmem>>) attributes {dimension_semantics = [], scalar_prefetch = 0 : i64, scratch_operands = 0 : i64, tpu.core_type = #tpu.core_type<tc>} {
    %c0 = arith.constant 0 : index
    %c0_0 = arith.constant 0 : index
    %c0_1 = arith.constant 0 : index
    %0 = vector.load %arg0[%c0, %c0_0, %c0_1] : memref<2x4x16xf32, #tpu.memory_space<vmem>>, vector<2x4x16xf32>
    %cst = arith.constant dense<0x7F800000> : vector<2x4xf32>
    %1 = vector.multi_reduction <minimumf>, %0, %cst [2] : vector<2x4x16xf32> to vector<2x4xf32>
    %2 = vector.shape_cast %1 : vector<2x4xf32> to vector<2x4x1xf32>
    %cst_2 = arith.constant dense<0x7F800000> : vector<4x1xf32>
    %3 = vector.multi_reduction <minimumf>, %2, %cst_2 [0] : vector<2x4x1xf32> to vector<4x1xf32>
    %4 = vector.shape_cast %3 : vector<4x1xf32> to vector<1x4x1xf32>
    %cst_3 = arith.constant dense<0xFF800000> : vector<2x4xf32>
    %5 = vector.multi_reduction <maximumf>, %0, %cst_3 [2] : vector<2x4x16xf32> to vector<2x4xf32>
    %6 = vector.shape_cast %5 : vector<2x4xf32> to vector<2x4x1xf32>
    %cst_4 = arith.constant dense<0xFF800000> : vector<4x1xf32>
    %7 = vector.multi_reduction <maximumf>, %6, %cst_4 [0] : vector<2x4x1xf32> to vector<4x1xf32>
    %8 = vector.shape_cast %7 : vector<4x1xf32> to vector<1x4x1xf32>
    %9 = vector.broadcast %4 : vector<1x4x1xf32> to vector<2x4x16xf32>
    %10 = arith.subf %0, %9 : vector<2x4x16xf32>
    %11 = arith.subf %8, %4 : vector<1x4x1xf32>
    %cst_5 = arith.constant 9.99999993E-9 : f32
    %12 = vector.broadcast %cst_5 : f32 to vector<1x4x1xf32>
    %13 = arith.addf %11, %12 : vector<1x4x1xf32>
    %14 = tpu.reciprocal %13 : vector<1x4x1xf32> -> vector<1x4x1xf32>
    %15 = vector.broadcast %14 : vector<1x4x1xf32> to vector<2x4x16xf32>
    %16 = arith.mulf %10, %15 : vector<2x4x16xf32>
    %c0_6 = arith.constant 0 : index
    %c0_7 = arith.constant 0 : index
    %c0_8 = arith.constant 0 : index
    %17 = vector.load %arg1[%c0_6, %c0_7, %c0_8] : memref<2x4x16xf32, #tpu.memory_space<vmem>>, vector<2x4x16xf32>
    tpu.vector_store %arg1[%c0_6, %c0_7, %c0_8], %16 {strides = array<i32>} : memref<2x4x16xf32, #tpu.memory_space<vmem>>, vector<2x4x16xf32>,
    return
  }
}

</mosaic_0001>

<bundles_post_ra>
// kernel: tpu_custom_call.1
= control target key start
LH: loop header
LB: loop body
LE: loop exit
PB: predicated region body
PF: predicated region fallthrough
CT: control target
= control target key end

     0   :  { %6 = vsyncpa [#allocation3], 0  ;;  %s175_s0 = inlined_call_operand.hbm [shape: f32[2,4,16], index: 0, kind: input, shape index: {}]   ;;  %s176_s1 = inlined_call_operand.hbm [shape: f32[2,4,16], index: 1, kind: output, shape index: {}]  }
   0x1   :  { %7 = vsyncpa [#allocation4], 0  ;;  %s125_s6 = smov [#allocation2]   ;;  %s77_s10 = scalar_lea.hbm %s175_s0, 128 }
   0x2   :  { %s13_s7 = sshll.u32 %s125_s6, 4  ;;  %p78_p0 = scmp.ne.s32.totalorder %s175_s0, %s77_s10  ;;  %s14_s7 = int_to_ptr.vmem [resolvable:$true] %s13_s7 }
   0x3   :  { %p81_p1 = scmp.lt.u32.totalorder %s77_s10, %s175_s0 }
   0x5   :  { %p83_p2 = pnand %p81_p1, %p78_p0 }
   0x7   :  { %86 = shalt.err (!%p83_p2)
}
   0x8   :  { %s87_s15 = scalar_lea.vmem %s14_s7, 128  ;;  %p92_p4 = scmp.lt.s32.totalorder %s14_s7, %s14_s7 }
   0x9   :  { %p88_p3 = scmp.ne.s32.totalorder %s14_s7, %s87_s15  ;;  %p93_p5 = scmp.lt.s32.totalorder %s87_s15, %s87_s15 }
   0xb   :  { %p94_p6 = por %p93_p5, %p92_p4 }
   0xd   :  { %p95_p7 = pnand %p94_p6, %p88_p3 }
   0xf   :  { %98 = shalt.err (!%p95_p7)
}
  0x10   :  { %s126_s16 = smov 64   ;;  %s127_s17 = smov 4  }
  0x11   :  { %19 = dma.hbm_to_vmem [thread:$0]  %s175_s0, 128, %s14_s7, [#allocation3], %s126_s16, %s126_s16, %s127_s17  }
  0x12   :  { %121 = dma.done.wait [#allocation3], 128  }
  0x13   :  { %122 = vsyncadd [#allocation3], 4294967168  ;;  %vm25_vm0 = vcmask 125952   ;;  %v23_v0 = vld [vmem:[#allocation2] sm:$0xf]  ;;  %vm32_vm1 = vcmask 1043456  }
  0x14   :  { %v24_v1 = vld [vmem:[#allocation2 + $0x4] sm:$0xf]  ;;  %v36_v2 = vsel %vm25_vm0, %v23_v0, -inf  ;;  %v26_v3 = vsel %vm25_vm0, %v23_v0, inf  ;;  %s128_s0 = smov [#allocation5]  }
  0x15   :  { %37 = vmax.xlane.f32.xlu1 %v36_v2  ;;  %27 = vmin.xlane.f32.xlu0 %v26_v3  ;;  %v39_v4 = vsel %vm25_vm0, %v24_v1, -inf  ;;  %v29_v5 = vsel %vm25_vm0, %v24_v1, inf  ;;  %s59_s20 = sshll.u32 %s128_s0, 4  ;;  %s60_s20 = int_to_ptr.vmem [resolvable:$true] %s59_s20 }
  0x16   :  { %s99_s21 = scalar_lea.vmem %s60_s20, 128  ;;  %p104_p9 = scmp.lt.s32.totalorder %s60_s20, %s60_s20 }
  0x17   :  { %p100_p8 = scmp.ne.s32.totalorder %s60_s20, %s99_s21  ;;  %p105_p10 = scmp.lt.s32.totalorder %s99_s21, %s99_s21 }
  0x19   :  { %40 = vmax.xlane.f32.xlu1 %v39_v4  ;;  %30 = vmin.xlane.f32.xlu0 %v29_v5  ;;  %p106_p11 = por %p105_p10, %p104_p9 }
  0x1b   :  { %p107_p12 = pnand %p106_p11, %p100_p8 }
  0xa2   :  { %v38_v6 = vpop.xlane.xlu1 %37  ;;  %v28_v7 = vpop.xlane.xlu0 %27 }
  0xa3   :  { %v42_v10 = vsel %vm32_vm1, %v38_v6, -inf  ;;  %v33_v11 = vsel %vm32_vm1, %v28_v7, inf }
  0xa6   :  { %v41_v8 = vpop.xlane.xlu1 %40  ;;  %v31_v9 = vpop.xlane.xlu0 %30 }
  0xa7   :  { %v43_v12 = vsel %vm32_vm1, %v41_v8, -inf  ;;  %v34_v13 = vsel %vm32_vm1, %v31_v9, inf }
  0xa8   :  { %v44_v14 = vmax.f32 %v42_v10, %v43_v12  ;;  %v35_v15 = vmin.f32 %v33_v11, %v34_v13 }
  0xaa   :  { %v47_v16 = vsub.f32 %v44_v14, %v35_v15  ;;  %v45_v18 = vsub.f32 %v23_v0, %v35_v15  ;;  %v46_v19 = vsub.f32 %v24_v1, %v35_v15 }
  0xac   :  { %v48_v17 = vadd.f32 1e-08, %v47_v16 }
  0xae   :  { %75 = vrcp.f32 %v48_v17 }
  0xb8   :  { %v76_v20 = vpop.eup %75 }
  0xb9   :  { %v50_v21 = vmul.f32 %v76_v20, %v45_v18  ;;  %v51_v22 = vmul.f32 %v76_v20, %v46_v19 }
  0xbb   :  { %52 = vst.msk [vmem:[#allocation5] sm:$0xf] %vm25_vm0, %v50_v21  ;;  %53 = vst.msk [vmem:[#allocation5 + $0x4] sm:$0xf] %vm25_vm0, %v51_v22 }
  0xbc   :  { %110 = shalt.err (!%p107_p12)
}
  0xbd   :  { %s111_s24 = scalar_lea.hbm %s176_s1, 128 }
  0xbe   :  { %p112_p13 = scmp.ne.s32.totalorder %s176_s1, %s111_s24  ;;  %p115_p0 = scmp.lt.u32.totalorder %s111_s24, %s176_s1 }
  0xc0   :  { %p117_p1 = pnand %p115_p0, %p112_p13 }
  0xc2   :  { %120 = shalt.err (!%p117_p1)
}
  0xc3   :  { %65 = dma.vmem_to_hbm [thread:$0]  %s60_s20, 128, %s176_s1, [#allocation4], %s126_s16, %s126_s16, %s127_s17  }
  0xc4   :  { %123 = dma.done.wait [#allocation4], 128  }
  0xc5   :  { %124 = vsyncadd [#allocation4], 4294967168 }
  0xc6   :  { %69 = vsyncpa [#allocation3], 1 }
  0xc7   :  { %70 = vsyncpa [#allocation4], 1 }

</bundles_post_ra>
